<compile_context>
chip_gen: v7x
topology: tpu7x:2x2x1
jax: 0.10.0
libtpu: 0.0.40
codegen_flags: <defaults>
</compile_context>

<pallas_src>
import jax
import jax.numpy as jnp
from jax.experimental import pallas as pl
from jax.experimental.pallas import tpu as pltpu


# ----------------------------- Pallas kernel --------------------------------
def _two_layer_kernel(x_ref, w1_ref, b1_ref, w2_ref, b2_ref, o_ref):
    """Fused Linear -> dropout(eval=id) -> Linear -> dropout(eval=id).

    x_ref:  (TILE_M, I)   compute dtype (bf16 or f32)
    w1_ref: (I, H)        compute dtype      b1_ref: (1, H) f32
    w2_ref: (H, O)        compute dtype      b2_ref: (1, O) f32
    o_ref:  (TILE_M, O)   output dtype
    """
    # Layer 1: MXU matmul with f32 accumulation, f32 bias add on the VPU.
    h = jnp.dot(x_ref[...], w1_ref[...], preferred_element_type=jnp.float32)
    h = h + b1_ref[...]
    # TODO(synk): dropout_1 (p=0.1) is identity in eval mode.

    # Layer 2: hidden activation stays in registers/VMEM — no HBM round-trip.
    y = jnp.dot(h.astype(w2_ref.dtype), w2_ref[...],
                preferred_element_type=jnp.float32)
    y = y + b2_ref[...]
    # TODO(synk): dropout_2 (p=0.1) is identity in eval mode.

    o_ref[...] = y.astype(o_ref.dtype)


# ------------------------------ host wrapper ---------------------------------
def linear_two_layer(x, w1, b1, w2, b2, *, tile_m=1024,
                     compute_dtype=jnp.bfloat16):
    """x: (..., input_size) -> (..., output_size).

    w1: (input_size, hidden)   b1: (hidden,)
    w2: (hidden, output_size)  b2: (output_size,)
    """
    orig_lead = x.shape[:-1]
    in_size, hidden = w1.shape
    _, out_size = w2.shape
    out_dtype = x.dtype

    x2 = x.reshape(-1, in_size)
    m = x2.shape[0]

    # Row tiling:
    #  * cap at ceil(m/2) so the "parallel" M axis has >= 2 blocks whenever m
    #    permits (keeps both v7x TensorCores busy),
    #  * floor / round to 8 (sublane constraint on the second-to-last dim),
    #  * NO jnp.pad: grid = cdiv(m, tile_m) and Pallas masks the edge block
    #    (rows are independent, so the OOB tail is never observed).
    tile_m = min(tile_m, pl.cdiv(m, 2))
    tile_m = max(8, ((tile_m + 7) // 8) * 8)
    grid_m = pl.cdiv(m, tile_m)

    cdt = jnp.dtype(compute_dtype)
    x2c = x2.astype(cdt)
    w1c = w1.astype(cdt)
    w2c = w2.astype(cdt)
    # Biases stay f32 (f32 accumulate + f32 bias add; safe on v5e's no-bf16 VPU).
    b1_2 = b1.reshape(1, hidden).astype(jnp.float32)
    b2_2 = b2.reshape(1, out_size).astype(jnp.float32)

    c_bytes = cdt.itemsize
    o_bytes = jnp.dtype(out_dtype).itemsize

    flops = 2 * m * (in_size * hidden + hidden * out_size)
    bytes_accessed = (m * in_size * c_bytes
                      + (in_size * hidden + hidden * out_size) * c_bytes
                      + (hidden + out_size) * 4
                      + m * out_size * o_bytes)

    # Real VMEM need: double-buffered x/out tiles + double-buffered weight and
    # bias blocks + the f32 hidden tile; 2x headroom, hard cap at 48 MiB
    # (safely below v7x's 64 MiB physical VMEM per TensorCore).
    vmem_need = (2 * tile_m * in_size * c_bytes
                 + 2 * tile_m * out_size * o_bytes
                 + 2 * (in_size * hidden + hidden * out_size) * c_bytes
                 + 2 * (hidden + out_size) * 4
                 + tile_m * hidden * 4)
    vmem_limit = int(min(max(2 * vmem_need, 8 * 1024 * 1024),
                         48 * 1024 * 1024))

    out = pl.pallas_call(
        _two_layer_kernel,
        out_shape=jax.ShapeDtypeStruct((m, out_size), out_dtype),
        grid_spec=pltpu.PrefetchScalarGridSpec(
            num_scalar_prefetch=0,
            grid=(grid_m,),
            in_specs=[
                pl.BlockSpec((tile_m, in_size), lambda i: (i, 0)),
                # Weights / biases: same block every step -> VMEM-resident,
                # no re-DMA across row tiles.
                pl.BlockSpec((in_size, hidden), lambda i: (0, 0)),
                pl.BlockSpec((1, hidden), lambda i: (0, 0)),
                pl.BlockSpec((hidden, out_size), lambda i: (0, 0)),
                pl.BlockSpec((1, out_size), lambda i: (0, 0)),
            ],
            out_specs=pl.BlockSpec((tile_m, out_size), lambda i: (i, 0)),
        ),
        compiler_params=pltpu.CompilerParams(
            dimension_semantics=("parallel",),
            vmem_limit_bytes=vmem_limit,
        ),
        cost_estimate=pl.CostEstimate(
            flops=flops, transcendentals=0, bytes_accessed=bytes_accessed),
    )(x2c, w1c, b1_2, w2c, b2_2)

    return out.reshape(*orig_lead, out_size)


# --------------------------- parameter construction --------------------------
def make_params(key, input_size, hidden_size, output_size):
    k1, kb1, k2, kb2 = jax.random.split(key, 4)
    # xavier_uniform_ with gain = calculate_gain('linear') = 1.0
    lim1 = (6.0 / (input_size + hidden_size)) ** 0.5
    lim2 = (6.0 / (hidden_size + output_size)) ** 0.5
    # stored pre-transposed as (in, out) for the channels-on-lanes matmul
    w1 = jax.random.uniform(k1, (input_size, hidden_size), jnp.float32,
                            -lim1, lim1)
    w2 = jax.random.uniform(k2, (hidden_size, output_size), jnp.float32,
                            -lim2, lim2)
    # PyTorch default Linear bias init: U(-1/sqrt(fan_in), 1/sqrt(fan_in))
    bb1 = 1.0 / (input_size ** 0.5)
    bb2 = 1.0 / (hidden_size ** 0.5)
    b1 = jax.random.uniform(kb1, (hidden_size,), jnp.float32, -bb1, bb1)
    b2 = jax.random.uniform(kb2, (output_size,), jnp.float32, -bb2, bb2)
    return w1, b1, w2, b2


# ------------------------------ pure-JAX reference ---------------------------
def reference(x, w1, b1, w2, b2):
    h = jnp.dot(x, w1) + b1          # layer_1
    # dropout_1: identity (eval)
    y = jnp.dot(h, w2) + b2          # layer_2
    # dropout_2: identity (eval)
    return y


# ----------------------------------- main ------------------------------------
if __name__ == "__main__":
    key = jax.random.PRNGKey(0)
    k_params, k_x = jax.random.split(key)

    B, T = 2, 8
    INPUT, HIDDEN, OUTPUT = 16, 32, 16

    w1, b1, w2, b2 = make_params(k_params, INPUT, HIDDEN, OUTPUT)
    x = jax.random.normal(k_x, (B, T, INPUT), jnp.float32)

    ref = jax.block_until_ready(reference(x, w1, b1, w2, b2))

    # Exact-precision path (f32 compute) for tight validation.
    out_f32 = jax.block_until_ready(
        linear_two_layer(x, w1, b1, w2, b2, compute_dtype=jnp.float32))
    assert out_f32.shape == (B, T, OUTPUT), out_f32.shape
    assert jnp.allclose(out_f32, ref, atol=1e-5, rtol=1e-5), float(
        jnp.max(jnp.abs(out_f32 - ref)))

    # Default fast path (bf16 I/O, f32 accumulate): looser tolerance.
    out_bf16 = jax.block_until_ready(linear_two_layer(x, w1, b1, w2, b2))
    assert out_bf16.shape == (B, T, OUTPUT), out_bf16.shape
    assert jnp.allclose(out_bf16, ref, atol=5e-2, rtol=5e-2), float(
        jnp.max(jnp.abs(out_bf16 - ref)))

    print("KERNEL_OK")
</pallas_src>

<mosaic_0001>
module attributes {stable_mosaic.version = 11 : i64} {
  func.func @_two_layer_kernel(%arg0: i32, %arg1: memref<8x16xf32, #tpu.memory_space<vmem>>, %arg2: memref<16x32xf32, #tpu.memory_space<vmem>>, %arg3: memref<1x32xf32, #tpu.memory_space<vmem>>, %arg4: memref<32x16xf32, #tpu.memory_space<vmem>>, %arg5: memref<1x16xf32, #tpu.memory_space<vmem>>, %arg6: memref<8x16xf32, #tpu.memory_space<vmem>>) attributes {dimension_semantics = [#tpu.dimension_semantics<parallel>], iteration_bounds = array<i64: 2>, scalar_prefetch = 0 : i64, scratch_operands = 0 : i64, tpu.core_type = #tpu.core_type<tc>, window_params = [{transform_indices = @transform_0, window_bounds = array<i64: 8, 16>}, {pipeline_mode = #tpu.pipeline_mode<synchronous>, transform_indices = @transform_1, window_bounds = array<i64: 16, 32>}, {pipeline_mode = #tpu.pipeline_mode<synchronous>, transform_indices = @transform_2, window_bounds = array<i64: 1, 32>}, {pipeline_mode = #tpu.pipeline_mode<synchronous>, transform_indices = @transform_3, window_bounds = array<i64: 32, 16>}, {pipeline_mode = #tpu.pipeline_mode<synchronous>, transform_indices = @transform_4, window_bounds = array<i64: 1, 16>}, {transform_indices = @transform_5, window_bounds = array<i64: 8, 16>}]} {
    %c0 = arith.constant 0 : index
    %c0_0 = arith.constant 0 : index
    %0 = vector.load %arg1[%c0, %c0_0] : memref<8x16xf32, #tpu.memory_space<vmem>>, vector<8x16xf32>
    %c0_1 = arith.constant 0 : index
    %c0_2 = arith.constant 0 : index
    %1 = vector.load %arg2[%c0_1, %c0_2] : memref<16x32xf32, #tpu.memory_space<vmem>>, vector<16x32xf32>
    %cst = arith.constant dense<0.000000e+00> : vector<8x32xf32>
    %2 = tpu.matmul %0, %1, %cst {dimension_numbers = #tpu.dot_dimension_numbers<[1], [0], [0], [1], [0, 0, 1, 1], [], []>} : vector<8x16xf32>, vector<16x32xf32>, vector<8x32xf32> -> vector<8x32xf32>
    %c0_3 = arith.constant 0 : index
    %c0_4 = arith.constant 0 : index
    %3 = vector.load %arg3[%c0_3, %c0_4] : memref<1x32xf32, #tpu.memory_space<vmem>>, vector<1x32xf32>
    %4 = vector.broadcast %3 : vector<1x32xf32> to vector<8x32xf32>
    %5 = arith.addf %2, %4 : vector<8x32xf32>
    %c0_5 = arith.constant 0 : index
    %c0_6 = arith.constant 0 : index
    %6 = vector.load %arg4[%c0_5, %c0_6] : memref<32x16xf32, #tpu.memory_space<vmem>>, vector<32x16xf32>
    %cst_7 = arith.constant dense<0.000000e+00> : vector<8x16xf32>
    %7 = tpu.matmul %5, %6, %cst_7 {dimension_numbers = #tpu.dot_dimension_numbers<[1], [0], [0], [1], [0, 0, 1, 1], [], []>} : vector<8x32xf32>, vector<32x16xf32>, vector<8x16xf32> -> vector<8x16xf32>
    %c0_8 = arith.constant 0 : index
    %c0_9 = arith.constant 0 : index
    %8 = vector.load %arg5[%c0_8, %c0_9] : memref<1x16xf32, #tpu.memory_space<vmem>>, vector<1x16xf32>
    %9 = vector.broadcast %8 : vector<1x16xf32> to vector<8x16xf32>
    %10 = arith.addf %7, %9 : vector<8x16xf32>
    %c0_10 = arith.constant 0 : index
    %c0_11 = arith.constant 0 : index
    %11 = vector.load %arg6[%c0_10, %c0_11] : memref<8x16xf32, #tpu.memory_space<vmem>>, vector<8x16xf32>
    tpu.vector_store %arg6[%c0_10, %c0_11], %10 {strides = array<i32>} : memref<8x16xf32, #tpu.memory_space<vmem>>, vector<8x16xf32>,
    return
  }
  func.func @transform_0(%arg0: i32) -> (i32, i32) {
    %c0_i32 = arith.constant 0 : i32
    %c0_i32_0 = arith.constant 0 : i32
    return %arg0, %c0_i32 : i32, i32
  }
  func.func @transform_1(%arg0: i32) -> (i32, i32) {
    %c0_i32 = arith.constant 0 : i32
    %c0_i32_0 = arith.constant 0 : i32
    %c0_i32_1 = arith.constant 0 : i32
    return %c0_i32, %c0_i32_0 : i32, i32
  }
  func.func @transform_2(%arg0: i32) -> (i32, i32) {
    %c0_i32 = arith.constant 0 : i32
    %c0_i32_0 = arith.constant 0 : i32
    %c0_i32_1 = arith.constant 0 : i32
    return %c0_i32, %c0_i32_0 : i32, i32
  }
  func.func @transform_3(%arg0: i32) -> (i32, i32) {
    %c0_i32 = arith.constant 0 : i32
    %c0_i32_0 = arith.constant 0 : i32
    %c0_i32_1 = arith.constant 0 : i32
    return %c0_i32, %c0_i32_0 : i32, i32
  }
  func.func @transform_4(%arg0: i32) -> (i32, i32) {
    %c0_i32 = arith.constant 0 : i32
    %c0_i32_0 = arith.constant 0 : i32
    %c0_i32_1 = arith.constant 0 : i32
    return %c0_i32, %c0_i32_0 : i32, i32
  }
  func.func @transform_5(%arg0: i32) -> (i32, i32) {
    %c0_i32 = arith.constant 0 : i32
    %c0_i32_0 = arith.constant 0 : i32
    return %arg0, %c0_i32 : i32, i32
  }
}

</mosaic_0001>

<bundles_post_ra>
// kernel: tpu_custom_call.1
= control target key start
LH: loop header
LB: loop body
LE: loop exit
PB: predicated region body
PF: predicated region fallthrough
CT: control target
= control target key end

     0   :  { %10 = vsyncpa [#allocation3], 0  ;;  %s778_s0 = inlined_call_operand.vmem [shape: f32[16,16], index: 0, kind: input, shape index: {}]   ;;  %s779_s1 = inlined_call_operand.vmem [shape: f32[16,32], index: 1, kind: input, shape index: {}]   ;;  %s780_s2 = inlined_call_operand.vmem [shape: f32[1,32], index: 2, kind: input, shape index: {}]   ;;  %s781_s3 = inlined_call_operand.vmem [shape: f32[32,16], index: 3, kind: input, shape index: {}]   ;;  %s782_s4 = inlined_call_operand.vmem [shape: f32[1,16], index: 4, kind: input, shape index: {}]   ;;  %s783_s5 = inlined_call_operand.hbm [shape: f32[16,16], index: 5, kind: output, shape index: {}]  }
   0x1   :  { %12 = vsyncpa [#allocation3 + $0x1], 0  ;;  %s652_s18 = smov 0   ;;  %s654_s19 = smov 0  }
   0x2   :  { %s656_s20 = smov 0   ;;  %s658_s21 = smov 0  }
   0x3 LB: > { %s673_s22 = sadd.s32 4294967295, %s616_s21   ;;  %s463_s23 = sadd.s32 4294967294, %s616_s21   ;;  %s616_s21 = sphi %s658_s21, %s789_s21   ;;  %s612_s20 = sphi %s656_s20, %s788_s20   ;;  %s608_s19 = sphi %s654_s19, %s787_s19   ;;  %s604_s18 = sphi %s652_s18, %s786_s18  }
   0x4   : > { %s677_s24 = sadd.s32 1, %s616_s21   ;;  %s135_s25 = sadd.s32 1, %s612_s20 }
   0x5   : > { %s132_s26 = ssub.s32 %s616_s21, %s677_s24  ;;  %p145_p0 = scmp.ne.s32.totalorder %s612_s20, %s608_s19 }
   0x6   : > { %p133_p1 = scmp.eq.s32.totalorder %s132_s26, 0  ;;  %p146_p2 = scmp.eq.s32.totalorder %s673_s22, 1 }
   0x7   : > { %p151_p3 = scmp.ne.s32.totalorder %s608_s19, %s604_s18  ;;  %p152_p4 = scmp.eq.s32.totalorder %s463_s23, 1 }
   0x8   : > { %s688_s27 = scalar_select %p133_p1, %s612_s20, %s135_s25  }
   0x9   : > { %p690_p5 = por %p146_p2, %p145_p0  ;;  %p694_p6 = por %p152_p4, %p151_p3 }
   0xa   : > { %p466_p7 = scmp.ge.s32.totalorder %s616_s21, 1  ;;  %p189_p8 = scmp.lt.s32.totalorder %s616_s21, 3 }
   0xc   : > { %p190_p9 = pnand %p466_p7, %p189_p8 }
   0xd   : > { %v221_v0 = vld [vmem:[%s779_s1] sm:$0xff] (!%p190_p9)  ;;  %v222_v1 = vld [vmem:[%s779_s1 + $0x8] sm:$0xff] (!%p190_p9)  ;;  %p216_p10 = scmp.lt.s32.totalorder (!%p190_p9), %s673_s22, 1  ;;  %v618_v2 = vmov (!%p190_p9), 0.0|0.0   ;;  %vm619_vm0 = vmmov (!%p190_p9), 0   ;;  %v620_v4 = vmov (!%p190_p9), 0.0  }
   0xe   : > { %193 = sbr.rel (%p190_p9) target bundleno = 468 (0x1d4), region = 40  ;;  %503 = vmatprep.subr.bf16.mxu0 (!%p190_p9), %v618_v2  ;;  %v504_v3 = vpack.c.bf16 (!%p190_p9), %v222_v1, %v221_v0  ;;  %489 = vmatprep.mubr.msk.f32.mxu0 (!%p190_p9), %vm619_vm0, %v620_v4  ;;  %v304_v5 = vld [vmem:[%s781_s3] sm:$0xff] (!%p190_p9)  ;;  %v305_v6 = vld [vmem:[%s781_s3 + $0x8] sm:$0xff] (!%p190_p9)  ;;  %vm230_vm1 = vcmask (!%p190_p9), 130048   ;;  %v306_v9 = vld [vmem:[%s781_s3 + $0x10] sm:$0xff] (!%p190_p9)  ;;  %vm315_vm2 = vcmask (!%p190_p9), 261120  }
   0xf   : > { %506 = vmatprep.subr.bf16.mxu1 (!%p190_p9), %v618_v2  ;;  %v507_v7 = vpack.c.bf16 (!%p190_p9), %v305_v6, %v304_v5  ;;  %500 = vmatprep.mubr.msk.f32.mxu1 (!%p190_p9), %vm619_vm0, %v620_v4  ;;  %v307_v10 = vld [vmem:[%s781_s3 + $0x18] sm:$0xff] (!%p190_p9)  ;;  %v469_v12 = vld [vmem:[%s780_s2] ss:$0 sm:$0xff] (!%p190_p9)  ;;  %s213_s8 = sand.u32 (!%p190_p9), 1, %s608_s19   ;;  %s474_s12 = sshll.u32 (!%p190_p9), %s673_s22, 7 }
  0x10   : > { %505 = vmatpush3.bf16.msra.mxu0 (!%p190_p9), %v504_v3  ;;  %v510_v11 = vpack.c.bf16 (!%p190_p9), %v307_v10, %v306_v9  ;;  %s467_s9 = sshll.u32 (!%p190_p9), %s213_s8, 3  ;;  %v471_v16 = vld [vmem:[%s782_s4] ss:$0 sm:$0xff] (!%p190_p9)  ;;  %s391_s23 = scalar_lea.sflag (!%p190_p9), [#allocation3], %s213_s8 }
  0x11   : > { %508 = vmatpush3.bf16.msra.mxu1 (!%p190_p9), %v507_v7 }
  0x12   : > { %509 = vmatprep.subr.bf16.mxu1 (!%p190_p9), %v618_v2 }
  0x15   : > { %s217_s13 = scalar_select %p216_p10, %s673_s22, 1  ;;  %511 = vmatpush3.bf16.msra.mxu1 %v510_v11 }
  0x16   : > { %s621_s22 = smov [#allocation2]  }
  0x17   : > { %s468_s14 = sshll.u32 %s217_s13, 3  ;;  %s215_s13 = scalar_lea.vmem [#allocation2], %s467_s9 }
  0x18   : > { %s219_s17 = scalar_lea.vmem %s778_s0, %s468_s14  ;;  %s404_s14 = sshll.u32 %s215_s13, 4  ;;  %s737_s14 = int_to_ptr.vmem [resolvable:$true] %s404_s14 }
  0x19   : > { %v220_v8 = vld [vmem:[%s219_s17] sm:$0xff]  ;;  %s735_s17 = scalar_lea.hbm %s783_s5, %s474_s12  ;;  %s554_s25 = scalar_lea.vmem %s737_s14, 128 }
  0x1a   : > { %490 = vmatmul.mubr.msk.f32.vlgmr.msra.gmra.mrb[0].mxu0 %vm230_vm1, %v220_v8  ;;  %p555_p11 = scmp.ne.s32.totalorder %s737_s14, %s554_s25  ;;  %s558_s26 = sshll.u32 %s621_s22, 4  ;;  %s559_s26 = int_to_ptr.vmem [resolvable:$false] %s558_s26 }
  0x1b   : > { %s560_s30 = scalar_lea.vmem %s559_s26, 256  ;;  %p561_p0 = scmp.lt.s32.totalorder %s737_s14, %s559_s26 }
  0x1c   : > { %p556_p12 = pnand %p555_p11, %p690_p5  ;;  %p562_p1 = scmp.lt.s32.totalorder %s560_s30, %s554_s25 }
  0x1e   : > { %p557_p13 = pneg %p556_p12  ;;  %p563_p2 = por %p562_p1, %p561_p0 }
  0x20   : > { %p564_p3 = pnand %p563_p2, %p557_p13 }
  0xed   : > { %v300_v13 = vpop.f32.mrb[0].mxu0 }
  0xee   : > { %v301_v14 = vadd.f32 %v469_v12, %v300_v13  ;;  %v491_v15 = vpop.f32.mrb[1].mxu0 }
  0xf0   : > { %501 = vmatmul.mubr.msk.f32.vlgmr.msra.gmra.mrb[0].mxu1 %vm315_vm2, %v301_v14 }
 0x1c3   : > { %v385_v17 = vpop.f32.mrb[0].mxu1 }
 0x1c4   : > { %v386_v18 = vadd.f32 %v471_v16, %v385_v17  ;;  %v502_v19 = vpop.f32.mrb[1].mxu1 }
 0x1c6   : > { %389 = vst.msk [vmem:[%s215_s13] sm:$0xff] %vm230_vm1, %v386_v18 }
 0x1c7   : > { %567 = shalt.err (!%p564_p3)
}
 0x1c8   : > { %s568_s6 = scalar_lea.hbm %s735_s17, 128  ;;  %s572_s9 = scalar_lea.hbm %s783_s5, 256 }
 0x1c9   : > { %p569_p4 = scmp.ne.s32.totalorder %s735_s17, %s568_s6  ;;  %p573_p9 = scmp.lt.u32.totalorder %s735_s17, %s783_s5 }
 0x1ca   : > { %p574_p10 = scmp.lt.u32.totalorder %s572_s9, %s568_s6  ;;  %p576_p12 = scmp.lt.u32.totalorder %s568_s6, %s735_s17 }
 0x1cb   : > { %p570_p7 = pnand %p569_p4, %p690_p5 }
 0x1cc   : > { %p575_p11 = por %p574_p10, %p573_p9 }
 0x1cd   : > { %p571_p8 = pneg %p570_p7 }
 0x1ce   : > { %p577_p13 = por %p576_p12, %p575_p11 }
 0x1d0   : > { %p578_p0 = pnand %p577_p13, %p571_p8 }
 0x1d2   : > { %581 = shalt.err (!%p578_p0)
}
 0x1d3   : > { %512 = dma.vmem_to_hbm [thread:$0]  (%p690_p5), %s737_s14, 128, %s735_s17, %s391_s23  }
 0x1d4 PF: > { %p518_p1 = scmp.ge.s32.totalorder %s616_s21, 2  ;;  %s416_s12 = sand.u32 1, %s604_s18  }
 0x1d5   : > { %s417_s13 = scalar_lea.sflag [#allocation3], %s416_s12 }
 0x1d6   : > { %p515_p2 = pnand %p518_p1, %p694_p6 }
 0x1d8   : > { %599 = dma.done.wait (!%p515_p2), %s417_s13, 128  }
 0x1d9   : > { %601 = vsyncadd (!%p515_p2), %s417_s13, 4294967168  ;;  %p15_p3 = scmp.ge.s32.totalorder %s677_s24, 4   ;;  %s786_s18 = smov %s608_s19 }
 0x1da   : > { %s787_s19 = smov %s612_s20  ;;  %s788_s20 = smov %s688_s27 }
 0x1db   : > { %s789_s21 = smov %s677_s24  ;;  %17 = sbr.rel (!%p15_p3) target bundleno = 3 (0x3), region = 75 }
 0x1e2   :  { %422 = vsyncpa [#allocation3], 1 }
 0x1e3   :  { %424 = vsyncpa [#allocation3 + $0x1], 1 }

</bundles_post_ra>
